<compile_context>
chip_gen: v7x
topology: tpu7x:2x2x1
jax: 0.10.0
libtpu: 0.0.40
codegen_flags: <defaults>
</compile_context>

<pallas_src>
import math

import jax
import jax.numpy as jnp
from jax import lax
from jax.experimental import pallas as pl
from jax.experimental.pallas import tpu as pltpu


# ---------------------------------------------------------------------------
# Fast path: tables resident in VMEM, gather via one-hot matmul on the MXU.
# ---------------------------------------------------------------------------
def _ctx_onehot_kernel(rows_ref, emb_ref, flag_ref, out_ref):
    # rows_ref : VMEM (Tr, 1)  int32   flattened (k*V + idx) row per output slot
    # emb_ref  : VMEM (KV, D)           flattened per-key embedding tables
    # flag_ref : VMEM (Tr, D)  float32  pre-tiled per-key flag
    # out_ref  : VMEM (Tr, D)  out dtype
    tr = rows_ref.shape[0]
    kv = emb_ref.shape[0]
    col = lax.broadcasted_iota(jnp.int32, (tr, kv), 1)
    onehot = (col == rows_ref[...]).astype(emb_ref.dtype)            # (Tr, KV)
    g = jnp.dot(onehot, emb_ref[...], preferred_element_type=jnp.float32)
    out_ref[...] = (g + flag_ref[...].astype(jnp.float32)).astype(out_ref.dtype)


# ---------------------------------------------------------------------------
# Huge-vocab fallback: tables stay in HBM, DMA-gather only the B*K needed rows.
# ---------------------------------------------------------------------------
def _ctx_hbm_gather_kernel(rows_smem, emb_hbm, flag_ref, out_ref, gath_ref, sem):
    # rows_smem: SMEM (BK,) int32        (scalar prefetch)
    # emb_hbm  : HBM  (KV, D)            (memory_space=pl.ANY -> manual DMA)
    # flag_ref : VMEM (BK, D) float32
    # out_ref  : VMEM (BK, D) out dtype
    # gath_ref : VMEM (BK, D) emb dtype  scratch for the gathered rows
    # sem      : single shared DMA semaphore (all copies are the same size)
    bk = gath_ref.shape[0]

    def issue(i, carry):
        r = rows_smem[i]
        pltpu.make_async_copy(emb_hbm.at[pl.ds(r, 1)],
                              gath_ref.at[pl.ds(i, 1)],
                              sem).start()
        return carry

    lax.fori_loop(0, bk, issue, 0, unroll=True)

    def drain(i, carry):
        # Same-size descriptor against the shared semaphore: one wait per issued copy.
        pltpu.make_async_copy(emb_hbm.at[pl.ds(0, 1)],
                              gath_ref.at[pl.ds(0, 1)],
                              sem).wait()
        return carry

    lax.fori_loop(0, bk, drain, 0, unroll=True)

    g = gath_ref[...].astype(jnp.float32)
    out_ref[...] = (g + flag_ref[...].astype(jnp.float32)).astype(out_ref.dtype)


# ---------------------------------------------------------------------------
# Wrapper
# ---------------------------------------------------------------------------
def _sublane_multiple(dtype) -> int:
    # Min sublane multiple for an unmasked store tile: 8 (f32), 16 (bf16), 32 (int8).
    return max(8, 32 // jnp.dtype(dtype).itemsize)


def _vmem_budget_bytes() -> int:
    # Generation-aware table-resident threshold: v7x has 64 MiB VMEM per TensorCore,
    # v5e/v6e have 128 MiB.  Keep ~half free for double-buffered blocks / scratch.
    try:
        cap = pltpu.get_tpu_info().vmem_capacity_bytes
    except Exception:
        cap = 64 << 20          # conservative (v7x) if the query is unavailable
    return min(cap // 2, 48 << 20)


def context_manager_forward(idx_kb, emb_kvd, flag_kd, out_dtype=jnp.float32,
                            force_hbm_gather=False):
    """ContextManager.forward.

    idx_kb : (K, B) int   -- batch[f'{key}_idx'] stacked over ctx_keys
    emb_kvd: (K, V, D)    -- per-key InfiniteVocabEmbedding weights
    flag_kd: (K, D)       -- per-key flag parameter
    returns (B, K, D) in out_dtype  (== torch.stack([...], dim=1).to(dtype=type))
    """
    K, B = idx_kb.shape
    Ke, V, D = emb_kvd.shape
    assert Ke == K and flag_kd.shape == (K, D)
    BK, KV = B * K, K * V
    emb_dtype = emb_kvd.dtype
    out_dtype = jnp.dtype(out_dtype)

    # Flatten per-key tables so a gather index is a single leading-axis row, and clamp
    # indices so a bad idx can neither read another key's rows nor trip DMA bounds checks.
    emb_flat = emb_kvd.reshape(KV, D)                               # contiguous, free
    idx = jnp.clip(idx_kb.astype(jnp.int32), 0, V - 1)              # (K, B)
    rows_kb = idx + (jnp.arange(K, dtype=jnp.int32) * V)[:, None]   # (K, B)
    rows = rows_kb.T.reshape(BK)                                    # slot order b*K + k
    flag_flat = jnp.tile(flag_kd.astype(jnp.float32), (B, 1))       # (BK, D), row i -> flag[i % K]

    table_bytes = KV * D * jnp.dtype(emb_dtype).itemsize
    use_fast = (not force_hbm_gather) and (2 * table_bytes <= _vmem_budget_bytes())

    if use_fast:
        # Row tiling: sublane-aligned tiles; keep >=2 grid steps when possible so the
        # "parallel" axis can be split across v7x's two TensorCores.
        mult = _sublane_multiple(out_dtype)
        if BK % mult == 0 and BK // mult >= 2:
            row_tile = mult
            while (row_tile * 2 <= 1024 and BK % (row_tile * 2) == 0
                   and BK // (row_tile * 2) >= 2):
                row_tile *= 2
        else:
            row_tile = BK           # full-extent block (always legal)
        grid_n = max(1, BK // row_tile)

        fast_vmem = (2 * table_bytes                 # double-buffered table block
                     + 4 * row_tile * D * 4          # flag + out blocks (double-buffered)
                     + 2 * row_tile * 128 * 4        # padded rows block
                     + (1 << 20))
        vmem_limit = None
        if fast_vmem > (16 << 20):                   # above the smallest scoped default
            vmem_limit = min(int(fast_vmem) + (4 << 20), 30 << 20)

        cost = pl.CostEstimate(
            flops=2 * BK * KV * D + BK * D,
            transcendentals=0,
            bytes_accessed=table_bytes + BK * (D * 4 + 4) + BK * D * out_dtype.itemsize)

        out_flat = pl.pallas_call(
            _ctx_onehot_kernel,
            out_shape=jax.ShapeDtypeStruct((BK, D), out_dtype),
            grid=(grid_n,),
            in_specs=[
                pl.BlockSpec((row_tile, 1), lambda i: (i, 0)),   # rows
                pl.BlockSpec((KV, D), lambda i: (0, 0)),         # tables, VMEM-resident
                pl.BlockSpec((row_tile, D), lambda i: (i, 0)),   # pre-tiled flag
            ],
            out_specs=pl.BlockSpec((row_tile, D), lambda i: (i, 0)),
            compiler_params=pltpu.CompilerParams(
                dimension_semantics=("parallel",),
                vmem_limit_bytes=vmem_limit),
            cost_estimate=cost,
        )(rows.reshape(BK, 1), emb_flat, flag_flat)
    else:
        # Huge-vocab fallback: tables never enter VMEM; only the BK needed rows move.
        # TODO(synk): dedup repeated (k, idx) rows before DMA to cut copies to ~K uniques.
        cost = pl.CostEstimate(
            flops=BK * D,
            transcendentals=0,
            bytes_accessed=(BK * D * jnp.dtype(emb_dtype).itemsize + BK * D * 4
                            + BK * D * out_dtype.itemsize))

        out_flat = pl.pallas_call(
            _ctx_hbm_gather_kernel,
            out_shape=jax.ShapeDtypeStruct((BK, D), out_dtype),
            grid_spec=pltpu.PrefetchScalarGridSpec(
                num_scalar_prefetch=1,                             # rows -> SMEM
                grid=(1,),
                in_specs=[
                    pl.BlockSpec(memory_space=pl.ANY),             # tables stay in HBM
                    pl.BlockSpec((BK, D), lambda i, rows_ref: (0, 0)),
                ],
                out_specs=pl.BlockSpec((BK, D), lambda i, rows_ref: (0, 0)),
                scratch_shapes=[
                    pltpu.VMEM((BK, D), emb_dtype),
                    pltpu.SemaphoreType.DMA,
                ]),
            compiler_params=pltpu.CompilerParams(
                dimension_semantics=("arbitrary",)),
            cost_estimate=cost,
        )(rows, emb_flat, flag_flat)

    # (BK, D) -> (B, K, D): contiguous reshape, free in XLA (identical HBM bytes).
    return out_flat.reshape(B, K, D)


if __name__ == "__main__":
    # Small, deterministic synthetic setup.
    keys = ["session", "subject"]       # ctx_keys
    K = len(keys)
    B = 8                               # batch
    V = 16                              # per-key vocab size (index 0 = "NA" padding)
    D = 128                             # dim
    out_dtype = jnp.float32             # the `type` argument of forward()

    root = jax.random.PRNGKey(0)
    k_emb, k_flag, k_idx = jax.random.split(root, 3)

    # InfiniteVocabEmbedding(dim, init_scale=1.0): normal(0, 1) weights, padding row 0 zeroed.
    emb_kvd = jax.random.normal(k_emb, (K, V, D), dtype=jnp.float32) * 1.0
    emb_kvd = emb_kvd.at[:, 0, :].set(0.0)

    # nn.Parameter(torch.randn(dim) / sqrt(dim)) per key.
    flag_kd = jax.random.normal(k_flag, (K, D), dtype=jnp.float32) / math.sqrt(D)

    # batch = {'session_idx': (B,), 'subject_idx': (B,)}
    idx_kb = jax.random.randint(k_idx, (K, B), 0, V, dtype=jnp.int32)
    batch = {f"{name}_idx": idx_kb[i] for i, name in enumerate(keys)}

    # Plain-JAX reference of the PyTorch forward: stack over keys at dim=1.
    ref = jnp.stack(
        [(emb_kvd[i][batch[f"{name}_idx"]] + flag_kd[i])
         for i, name in enumerate(keys)],
        axis=1)                                                    # (B, K, D) f32

    # Fast path (table resident in VMEM, one-hot MXU gather).
    out_fast = jax.block_until_ready(
        context_manager_forward(idx_kb, emb_kvd, flag_kd, out_dtype))
    assert out_fast.shape == (B, K, D), out_fast.shape
    assert jnp.allclose(out_fast, ref.astype(out_dtype), atol=1e-5, rtol=1e-5)

    # Huge-vocab fallback path (HBM row-gather), exercised explicitly.
    out_hbm = jax.block_until_ready(
        context_manager_forward(idx_kb, emb_kvd, flag_kd, out_dtype,
                                force_hbm_gather=True))
    assert jnp.allclose(out_hbm, ref.astype(out_dtype), atol=1e-5, rtol=1e-5)

    # bf16 output dtype (the `.to(dtype=type)` cast path).
    out_bf16 = jax.block_until_ready(
        context_manager_forward(idx_kb, emb_kvd, flag_kd, jnp.bfloat16))
    assert jnp.allclose(out_bf16.astype(jnp.float32),
                        ref.astype(jnp.bfloat16).astype(jnp.float32),
                        atol=1e-2, rtol=1e-2)

    print("KERNEL_OK")
</pallas_src>

<mosaic_0001>
module attributes {stable_mosaic.version = 11 : i64} {
  func.func @_ctx_onehot_kernel(%arg0: i32, %arg1: memref<8x1xi32, #tpu.memory_space<vmem>>, %arg2: memref<32x128xf32, #tpu.memory_space<vmem>>, %arg3: memref<8x128xf32, #tpu.memory_space<vmem>>, %arg4: memref<8x128xf32, #tpu.memory_space<vmem>>) attributes {dimension_semantics = [#tpu.dimension_semantics<parallel>], iteration_bounds = array<i64: 2>, scalar_prefetch = 0 : i64, scratch_operands = 0 : i64, tpu.core_type = #tpu.core_type<tc>, window_params = [{transform_indices = @transform_0, window_bounds = array<i64: 8, 1>}, {pipeline_mode = #tpu.pipeline_mode<synchronous>, transform_indices = @transform_1, window_bounds = array<i64: 32, 128>}, {transform_indices = @transform_2, window_bounds = array<i64: 8, 128>}, {transform_indices = @transform_3, window_bounds = array<i64: 8, 128>}]} {
    %0 = tpu.iota {dimensions = array<i32: 1>} : vector<8x32xi32>
    %c0 = arith.constant 0 : index
    %c0_0 = arith.constant 0 : index
    %1 = vector.load %arg1[%c0, %c0_0] : memref<8x1xi32, #tpu.memory_space<vmem>>, vector<8x1xi32>
    %2 = vector.broadcast %1 : vector<8x1xi32> to vector<8x32xi32>
    %3 = arith.cmpi eq, %0, %2 : vector<8x32xi32>
    %4 = arith.extui %3 : vector<8x32xi1> to vector<8x32xi32>
    %5 = arith.sitofp %4 : vector<8x32xi32> to vector<8x32xf32>
    %c0_1 = arith.constant 0 : index
    %c0_2 = arith.constant 0 : index
    %6 = vector.load %arg2[%c0_1, %c0_2] : memref<32x128xf32, #tpu.memory_space<vmem>>, vector<32x128xf32>
    %cst = arith.constant dense<0.000000e+00> : vector<8x128xf32>
    %7 = tpu.matmul %5, %6, %cst {dimension_numbers = #tpu.dot_dimension_numbers<[1], [0], [0], [1], [0, 0, 1, 1], [], []>} : vector<8x32xf32>, vector<32x128xf32>, vector<8x128xf32> -> vector<8x128xf32>
    %c0_3 = arith.constant 0 : index
    %c0_4 = arith.constant 0 : index
    %8 = vector.load %arg3[%c0_3, %c0_4] : memref<8x128xf32, #tpu.memory_space<vmem>>, vector<8x128xf32>
    %9 = arith.addf %7, %8 : vector<8x128xf32>
    %c0_5 = arith.constant 0 : index
    %c0_6 = arith.constant 0 : index
    %10 = vector.load %arg4[%c0_5, %c0_6] : memref<8x128xf32, #tpu.memory_space<vmem>>, vector<8x128xf32>
    tpu.vector_store %arg4[%c0_5, %c0_6], %9 {strides = array<i32>} : memref<8x128xf32, #tpu.memory_space<vmem>>, vector<8x128xf32>,
    return
  }
  func.func @transform_0(%arg0: i32) -> (i32, i32) {
    %c0_i32 = arith.constant 0 : i32
    %c0_i32_0 = arith.constant 0 : i32
    return %arg0, %c0_i32 : i32, i32
  }
  func.func @transform_1(%arg0: i32) -> (i32, i32) {
    %c0_i32 = arith.constant 0 : i32
    %c0_i32_0 = arith.constant 0 : i32
    %c0_i32_1 = arith.constant 0 : i32
    return %c0_i32, %c0_i32_0 : i32, i32
  }
  func.func @transform_2(%arg0: i32) -> (i32, i32) {
    %c0_i32 = arith.constant 0 : i32
    %c0_i32_0 = arith.constant 0 : i32
    return %arg0, %c0_i32 : i32, i32
  }
  func.func @transform_3(%arg0: i32) -> (i32, i32) {
    %c0_i32 = arith.constant 0 : i32
    %c0_i32_0 = arith.constant 0 : i32
    return %arg0, %c0_i32 : i32, i32
  }
}

</mosaic_0001>

<bundles_post_ra>
// kernel: tpu_custom_call.1
= control target key start
LH: loop header
LB: loop body
LE: loop exit
PB: predicated region body
PF: predicated region fallthrough
CT: control target
= control target key end

     0   :  { %8 = vsyncpa [#allocation3], 0  ;;  %s740_s0 = inlined_call_operand.vmem [shape: s32[16,1], index: 0, kind: input, shape index: {}]   ;;  %s741_s1 = inlined_call_operand.hbm [shape: f32[32,128], index: 1, kind: input, shape index: {}]   ;;  %s742_s2 = inlined_call_operand.vmem [shape: f32[16,128], index: 2, kind: input, shape index: {}]   ;;  %s743_s3 = inlined_call_operand.hbm [shape: f32[16,128], index: 3, kind: output, shape index: {}]  }
   0x1   :  { %9 = vsyncpa [#allocation4], 0 }
   0x2   :  { %11 = vsyncpa [#allocation4 + $0x1], 0  ;;  %s602_s12 = smov 0   ;;  %s604_s13 = smov 0  }
   0x3   :  { %s606_s14 = smov 0   ;;  %s608_s15 = smov 0  }
   0x4 LB: > { %s623_s16 = sadd.s32 4294967295, %s572_s15   ;;  %s384_s17 = sadd.s32 4294967294, %s572_s15   ;;  %s572_s15 = sphi %s608_s15, %s759_s15   ;;  %s568_s14 = sphi %s606_s14, %s758_s14   ;;  %s564_s13 = sphi %s604_s13, %s757_s13   ;;  %s560_s12 = sphi %s602_s12, %s756_s12  }
   0x5   : > { %s627_s18 = sadd.s32 1, %s572_s15   ;;  %s97_s19 = sadd.s32 1, %s568_s14 }
   0x6   : > { %s94_s20 = ssub.s32 %s572_s15, %s627_s18  ;;  %p107_p0 = scmp.ne.s32.totalorder %s568_s14, %s564_s13 }
   0x7   : > { %p95_p1 = scmp.eq.s32.totalorder %s94_s20, 0  ;;  %p108_p2 = scmp.eq.s32.totalorder %s623_s16, 1 }
   0x8   : > { %p113_p3 = scmp.ne.s32.totalorder %s564_s13, %s560_s12  ;;  %p114_p4 = scmp.eq.s32.totalorder %s384_s17, 1 }
   0x9   : > { %s638_s21 = scalar_select %p95_p1, %s568_s14, %s97_s19  }
   0xa   : > { %p640_p5 = por %p108_p2, %p107_p0  ;;  %p644_p6 = por %p114_p4, %p113_p3 }
   0xb   : > { %p385_p7 = scmp.ge.s32.totalorder %s572_s15, 1  ;;  %p121_p8 = scmp.lt.s32.totalorder %s572_s15, 3 }
   0xc   : > { %s747_s22 = scalar_select %p640_p5, 1, 0 }
   0xd   : > { %s748_s23 = scalar_select %p644_p6, 1, 0 }
   0xe   : > { %p744_p9 = scmp.eq.s32.totalorder %s623_s16, 0  ;;  %p651_p10 = pnand %p385_p7, %p121_p8 }
   0xf   : > { %s574_s25 = smov [#allocation2]   ;;  %s478_s30 = scalar_lea.hbm %s741_s1, 512 }
  0x10   : > { %s749_s24 = scalar_select %p651_p10, 1, 0 }
  0x11   : > { %s133_s26 = sshll.u32 %s574_s25, 4  ;;  %p427_p11 = pneg %p651_p10  ;;  %s134_s26 = int_to_ptr.vmem [resolvable:$true] %s133_s26 }
  0x12   : > { %p479_p13 = scmp.ne.s32.totalorder %s741_s1, %s478_s30  ;;  %p485_p3 = scmp.lt.u32.totalorder %s478_s30, %s741_s1 }
  0x13   : > { %p659_p12 = pnand %p744_p9, %p427_p11 }
  0x15   : > { %p480_p0 = pneg %p659_p12 }
  0x17   : > { %p481_p1 = pnand %p480_p0, %p479_p13 }
  0x19   : > { %p482_p2 = pneg %p481_p1 }
  0x1b   : > { %p487_p4 = pnand %p485_p3, %p482_p2 }
  0x1d   : > { %490 = shalt.err (!%p487_p4)
}
  0x1e   : > { %s491_s8 = scalar_lea.vmem %s134_s26, 512  ;;  %p499_p9 = scmp.lt.s32.totalorder %s134_s26, %s134_s26 }
  0x1f   : > { %p492_p7 = scmp.ne.s32.totalorder %s134_s26, %s491_s8  ;;  %p500_p6 = scmp.lt.s32.totalorder %s491_s8, %s491_s8 }
  0x21   : > { %p494_p8 = pnand %p492_p7, %p480_p0  ;;  %p501_p5 = por %p500_p6, %p499_p9 }
  0x23   : > { %p495_p11 = pneg %p494_p8 }
  0x25   : > { %p502_p10 = pnand %p501_p5, %p495_p11 }
  0x27   : > { %505 = shalt.err (!%p502_p10)
}
  0x28   : > { %s575_s9 = smov 128   ;;  %s576_s10 = smov 8  }
  0x29   : > { %430 = dma.hbm_to_vmem [thread:$0]  (!%p659_p12), %s741_s1, 512, %s134_s26, [#allocation3], %s575_s9, %s575_s9, %s576_s10  }
  0x2a   : > { %p751_p13 = scmp.ne.s32.totalorder %s749_s24, 0 }
  0x2b   : > { %p752_p1 = scmp.eq.s32.totalorder (!%p751_p13), %s623_s16, 0 }
  0x2c   : > { %163 = sbr.rel (%p751_p13) target bundleno = 417 (0x1a1), region = 32 }
  0x33   : > { %551 = dma.done.wait (%p752_p1), [#allocation3], 512   ;;  %p753_p0 = pmov %p752_p1 }
  0x34   : > { %p190_p5 = scmp.lt.s32.totalorder %s623_s16, 1  ;;  %v577_v0 = vmov 0   ;;  %v578_v1 = vmov 0.0|0.0   ;;  %v207_v3 = vld [vmem:[#allocation2] sm:$0xff]  ;;  %v208_v4 = vld [vmem:[#allocation2 + $0x8] sm:$0xff]  ;;  %v209_v6 = vld [vmem:[#allocation2 + $0x10] sm:$0xff]  ;;  %v198_v10 = vlaneseq }
  0x35   : > { %553 = vsyncadd (%p753_p0), [#allocation3], 4294966784  ;;  %477 = vset.pattern.permute.xlu0 %v577_v0  ;;  %415 = vmatprep.subr.bf16.mxu0 %v578_v1  ;;  %v416_v5 = vpack.c.bf16 %v208_v4, %v207_v3  ;;  %v210_v7 = vld [vmem:[#allocation2 + $0x18] sm:$0xff]  ;;  %vm579_vm0 = vmmov 0   ;;  %v580_v8 = vmov 0.0   ;;  %vm212_vm1 = vcmask 261120  }
  0x36   : > { %s191_s19 = scalar_select %p190_p5, %s623_s16, 1  ;;  %412 = vmatprep.mubr.msk.f32.mxu0 %vm579_vm0, %v580_v8  ;;  %v419_v9 = vpack.c.bf16 %v210_v7, %v209_v6  ;;  %v199_v11 = vand.u32 127, %v198_v10 }
  0x37   : > { %417 = vmatpush3.bf16.msra.mxu0 %v416_v5  ;;  %s187_s27 = sand.u32 1, %s564_s13   ;;  %s396_s5 = sshll.u32 %s623_s16, 7 }
  0x38   : > { %s391_s20 = sshll.u32 %s191_s19, 3  ;;  %418 = vmatprep.subr.bf16.mxu0 %v578_v1  ;;  %s390_s28 = sshll.u32 %s187_s27, 3 }
  0x39   : > { %s193_s24 = scalar_lea.vmem %s740_s0, %s391_s20  ;;  %s197_s4 = scalar_lea.vmem %s742_s2, %s391_s20 }
  0x3a   : > { %v200_v2 = vld [vmem:[%s193_s24] sm:$0xff]  ;;  %s189_s6 = scalar_lea.vmem [#allocation5], %s390_s28  ;;  %s698_s10 = scalar_lea.hbm %s743_s3, %s396_s5 }
  0x3b   : > { %202 = vperm.xlu0 %477, %v200_v2   ;;  %420 = vmatpush3.bf16.msra.mxu0 %v419_v9  ;;  %v211_v14 = vld [vmem:[%s197_s4] sm:$0xff]  ;;  %s301_s7 = sshll.u32 %s189_s6, 4  ;;  %s288_s11 = scalar_lea.sflag [#allocation4], %s187_s27  ;;  %s700_s7 = int_to_ptr.vmem [resolvable:$true] %s301_s7 }
  0x3c   : > { %s506_s17 = scalar_lea.vmem %s700_s7, 128  ;;  %p754_p9 = scmp.ne.s32.totalorder %s747_s22, 0 }
  0x3d   : > { %p507_p6 = scmp.ne.s32.totalorder %s700_s7, %s506_s17  ;;  %s581_s16 = smov [#allocation5]  }
  0x3e   : > { %s510_s19 = sshll.u32 %s581_s16, 4  ;;  %s511_s19 = int_to_ptr.vmem [resolvable:$false] %s510_s19 }
  0x3f   : > { %p508_p10 = pnand %p507_p6, %p754_p9  ;;  %s512_s20 = scalar_lea.vmem %s511_s19, 256 }
  0x40   : > { %p513_p2 = scmp.lt.s32.totalorder %s700_s7, %s511_s19  ;;  %p514_p3 = scmp.lt.s32.totalorder %s512_s20, %s506_s17 }
  0x41   : > { %p509_p12 = pneg %p508_p10 }
  0x42   : > { %p515_p4 = por %p514_p3, %p513_p2 }
  0x44   : > { %p516_p7 = pnand %p515_p4, %p509_p12 }
  0xba   : > { %v203_v12 = vpop.permute.xlu0 %202 }
  0xbb   : > { %vm204_vm2 = vcmp.eq.s32.totalorder %v199_v11, %v203_v12 }
  0xbc   : > { %v393_v13 = vsel %vm204_vm2, 1.0, %v580_v8 }
  0xbd   : > { %413 = vmatmul.mubr.msk.f32.vlgmr.msra.gmra.mrb[0].mxu0 %vm212_vm1, %v393_v13 }
 0x190   : > { %v282_v15 = vpop.f32.mrb[0].mxu0 }
 0x191   : > { %v283_v16 = vadd.f32 %v282_v15, %v211_v14  ;;  %v414_v17 = vpop.f32.mrb[1].mxu0 }
 0x193   : > { %286 = vst [vmem:[%s189_s6] sm:$0xff] %v283_v16 }
 0x194   : > { %519 = shalt.err (!%p516_p7)
}
 0x195   : > { %s520_s25 = scalar_lea.hbm %s698_s10, 128  ;;  %s524_s27 = scalar_lea.hbm %s743_s3, 256 }
 0x196   : > { %p521_p8 = scmp.ne.s32.totalorder %s698_s10, %s520_s25  ;;  %p525_p1 = scmp.lt.u32.totalorder %s698_s10, %s743_s3 }
 0x197   : > { %p526_p0 = scmp.lt.u32.totalorder %s524_s27, %s520_s25  ;;  %p528_p6 = scmp.lt.u32.totalorder %s520_s25, %s698_s10 }
 0x198   : > { %p522_p11 = pnand %p521_p8, %p754_p9 }
 0x199   : > { %p527_p5 = por %p526_p0, %p525_p1 }
 0x19a   : > { %p523_p13 = pneg %p522_p11 }
 0x19b   : > { %p529_p10 = por %p528_p6, %p527_p5 }
 0x19d   : > { %p530_p12 = pnand %p529_p10, %p523_p13 }
 0x19f   : > { %533 = shalt.err (!%p530_p12)
}
 0x1a0   : > { %425 = dma.vmem_to_hbm [thread:$0]  (%p754_p9), %s700_s7, 128, %s698_s10, %s288_s11  }
 0x1a1 PF: > { %p437_p2 = scmp.ge.s32.totalorder %s572_s15, 2  ;;  %s313_s30 = sand.u32 1, %s560_s12  }
 0x1a2   : > { %p755_p3 = scmp.ne.s32.totalorder %s748_s23, 0  ;;  %s314_s4 = scalar_lea.sflag [#allocation4], %s313_s30 }
 0x1a4   : > { %p432_p4 = pnand %p437_p2, %p755_p3 }
 0x1a6   : > { %555 = dma.done.wait (!%p432_p4), %s314_s4, 128  }
 0x1a7   : > { %557 = vsyncadd (!%p432_p4), %s314_s4, 4294967168  ;;  %p14_p7 = scmp.ge.s32.totalorder %s627_s18, 4   ;;  %s756_s12 = smov %s564_s13 }
 0x1a8   : > { %s757_s13 = smov %s568_s14  ;;  %s758_s14 = smov %s638_s21 }
 0x1a9   : > { %s759_s15 = smov %s627_s18  ;;  %16 = sbr.rel (!%p14_p7) target bundleno = 4 (0x4), region = 75 }
 0x1b0   :  { %319 = vsyncpa [#allocation3], 1 }
 0x1b1   :  { %321 = vsyncpa [#allocation3 + $0x1], 1 }
 0x1b2   :  { %322 = vsyncpa [#allocation4], 1 }
 0x1b3   :  { %324 = vsyncpa [#allocation4 + $0x1], 1 }

</bundles_post_ra>
